<compile_context>
chip_gen: v7x
topology: tpu7x:2x2x1
jax: 0.10.0
libtpu: 0.0.40
codegen_flags: <defaults>
</compile_context>

<pallas_src>
import jax
import jax.numpy as jnp
from jax import lax
from jax.experimental import pallas as pl
from jax.experimental.pallas import tpu as pltpu

LAMBDA_WEIGHT = 0.3  # Attention.lambda_weight


def _vmem_limit_bytes():
    # v5e/v6e (128 MiB physical): allow ~3/4 of capacity so big batch tiles and
    # large, well-pipelined DMAs fit.  v7x (64 MiB per TC): stay at capacity/2.
    try:
        cap = pltpu.get_tpu_info().vmem_capacity_bytes
    except Exception:  # interpret mode / query unavailable -> conservative default
        cap = 64 * 1024 * 1024
    if cap >= 100 * 1024 * 1024:
        return int(cap * 3 // 4)          # ~96 MiB on 128 MiB parts
    return int(cap // 2)                  # 32 MiB on v7x


_VMEM_LIMIT_BYTES = _vmem_limit_bytes()


def _select_batch_tile(B, S, C):
    """Batch elements per grid step (TB).

    Goals (perf review):
      * make TB*S rows large (>=256 where B allows) so the MXU M dimension is
        filled and per-grid-step overhead is amortised,
      * fit the double-buffered x block + f32 intermediates + resident weights
        inside the per-generation VMEM budget (v7x has half of v5e/v6e),
      * keep >= 2 grid steps when B >= 2 so v7x's two TensorCores both work,
      * TB divides B exactly so no partial / garbage blocks are ever produced.
    """
    per_batch = 20 * S * C                 # f32 x block (2 bufs) + bf16 copy + v f32/bf16
    weights = 4 * C * C + 16 * C           # double-buffered bf16 W1 + biases + w2
    budget = max(_VMEM_LIMIT_BYTES // 2 - weights, per_batch)
    tb_vmem = max(1, budget // per_batch)
    tb_cores = B // 2 if B >= 2 else 1     # keep at least 2 grid steps (v7x: 2 TCs)
    tb_max = max(1, min(tb_vmem, tb_cores))
    tb = 1
    for d in range(1, B + 1):              # largest divisor of B that fits
        if B % d == 0 and d <= tb_max:
            tb = d
    return tb


# --------------------------- Pallas kernel -----------------------------------

def _attention_kernel(x_ref, w1_ref, b1_ref, w2_ref, b2_ref, o_ref):
    _, n_rows, _ = x_ref.shape            # n_rows = TB * S  (flattened batch tile)
    tb = o_ref.shape[1]
    s_len = n_rows // tb

    x = x_ref[0]                          # (N, C) f32
    xb = x.astype(jnp.bfloat16)           # bf16 MXU inputs, f32 accumulate

    # linear1 + tanh: one big (N, C) @ (C, C) bf16 MXU matmul; tanh on the EUP.
    v = jnp.tanh(
        jnp.dot(xb, w1_ref[...], preferred_element_type=jnp.float32) + b1_ref[...])

    # linear2 (lambda_weight already folded into w2/b2) -> (N, 1) scores.
    scores = jnp.dot(v.astype(jnp.bfloat16), w2_ref[...],
                     preferred_element_type=jnp.float32) + b2_ref[...]

    # Softmax over each batch element's own S rows.  A single global max is a
    # valid stabiliser (softmax is shift-invariant per segment) and scores are
    # tanh-bounded, so no segment can underflow to an all-zero denominator.
    m = jnp.max(scores, axis=0, keepdims=True)          # (1, 1)
    e = jnp.exp(scores - m)                              # (N, 1), values in [0, 1]

    # Block-diagonal segment matrix: ebd[n, b] = e[n] if row n belongs to batch b.
    row = lax.broadcasted_iota(jnp.int32, (n_rows, tb), 0)
    col = lax.broadcasted_iota(jnp.int32, (n_rows, tb), 1)
    in_seg = (row >= col * s_len) & (row < (col + 1) * s_len)
    ebd = jnp.where(in_seg, e, 0.0)                      # (N, TB) f32

    # Per-batch denominator and attention-weighted sum, both on the MXU
    # (contract the row axis); output (TB, C) is lane-dense.
    dims = (((0,), (0,)), ((), ()))
    denom = lax.dot_general(ebd, jnp.ones((n_rows, 1), jnp.float32), dims,
                            preferred_element_type=jnp.float32)   # (TB, 1)
    num = lax.dot_general(ebd, x, dims,
                          preferred_element_type=jnp.float32)     # (TB, C) f32
    o_ref[0] = num * pl.reciprocal(denom, approx=True)


# --------------------------- wrapper ------------------------------------------

@jax.jit
def attention_forward(x, params):
    B = x.shape[0]
    C = x.shape[-1]
    S = 1
    for d in x.shape[1:-1]:
        S *= d

    TB = _select_batch_tile(B, S, C)
    G = B // TB                                   # grid length (>= 2 when B >= 2)

    # Free, pad-free reshape: (B, ..., C) -> (G, TB*S, C).  No extra HBM pass.
    # Blocks use full-extent trailing dims, so no (8,128) padding of S is needed
    # (C = 256 default is already lane aligned; unaligned C still runs, just slower).
    x3 = x.reshape(G, TB * S, C).astype(jnp.float32)

    w1 = params["w1"].astype(jnp.bfloat16)                              # (C, C)
    b1 = params["b1"].astype(jnp.float32).reshape(1, C)                 # (1, C)
    # Fold lambda_weight into linear2:  lambda*(v@w2 + b2) == v@(lambda*w2) + lambda*b2
    w2 = (params["w2"] * LAMBDA_WEIGHT).astype(jnp.bfloat16).reshape(C, 1)
    b2 = (params["b2"] * LAMBDA_WEIGHT).astype(jnp.float32).reshape(1, 1)

    cost = pl.CostEstimate(
        flops=2 * B * S * C * (C + 2),            # linear1 + linear2 + weighted sum
        transcendentals=B * S * (C + 1),          # tanh + exp
        bytes_accessed=B * S * C * 4 + C * C * 2 + 6 * C + B * C * 4,
    )

    out = pl.pallas_call(
        _attention_kernel,
        grid=(G,),
        in_specs=[
            pl.BlockSpec((1, TB * S, C), lambda g: (g, 0, 0)),   # x rows (per step)
            pl.BlockSpec((C, C), lambda g: (0, 0)),              # W1 (resident)
            pl.BlockSpec((1, C), lambda g: (0, 0)),              # b1
            pl.BlockSpec((C, 1), lambda g: (0, 0)),              # lambda*w2
            pl.BlockSpec((1, 1), lambda g: (0, 0)),              # lambda*b2
        ],
        out_specs=pl.BlockSpec((1, TB, C), lambda g: (g, 0, 0)),
        out_shape=jax.ShapeDtypeStruct((G, TB, C), jnp.float32),
        compiler_params=pltpu.CompilerParams(
            dimension_semantics=("parallel",),    # batch steps split across TCs (v7x)
            vmem_limit_bytes=_VMEM_LIMIT_BYTES,
        ),
        cost_estimate=cost,
    )(x3, w1, b1, w2, b2)

    return out.reshape(B, C)


# --------------------------- reference & init ---------------------------------

def attention_reference(x, params, lambda_weight=LAMBDA_WEIGHT):
    B = x.shape[0]
    C = x.shape[-1]
    x3 = x.reshape(B, -1, C)
    v = jnp.tanh(x3 @ params["w1"] + params["b1"])
    s = jnp.einsum("bsc,c->bs", v, params["w2"]) + params["b2"]
    p = jax.nn.softmax(s * lambda_weight, axis=1)
    return jnp.sum(x3 * p[..., None], axis=1)


def init_params(key, n_channels=256):
    k1, k2, k3, k4 = jax.random.split(key, 4)
    c = n_channels
    # weights stored as (in, out) == torch weight.T
    return {
        "w1": jax.random.normal(k1, (c, c), jnp.float32) / jnp.sqrt(c),
        "b1": 0.01 * jax.random.normal(k2, (c,), jnp.float32),
        "w2": jax.random.normal(k3, (c,), jnp.float32) / jnp.sqrt(c),
        "b2": 0.01 * jax.random.normal(k4, (1,), jnp.float32),
    }


if __name__ == "__main__":
    key = jax.random.PRNGKey(0)
    pkey, xkey = jax.random.split(key)
    C = 256                                   # module default n_channels
    params = init_params(pkey, n_channels=C)
    # Small (B, H, W, C) input; forward reshapes to (B, H*W, C) like the torch
    # module's x.reshape(dims[0], -1, dims[-1]).  B=2 -> 2 grid steps.
    x = jax.random.normal(xkey, (2, 4, 4, C), jnp.float32)

    out = attention_forward(x, params)
    out = jax.block_until_ready(out)
    assert out.shape == (2, C) and out.dtype == jnp.float32

    ref = attention_reference(x, params)
    max_err = float(jnp.max(jnp.abs(out - ref)))
    assert jnp.allclose(out, ref, atol=2e-2, rtol=2e-2), max_err

    print("KERNEL_OK")
</pallas_src>

<mosaic_0001>
module attributes {stable_mosaic.version = 11 : i64} {
  func.func @_attention_kernel(%arg0: i32, %arg1: memref<1x16x256xf32, #tpu.memory_space<vmem>>, %arg2: memref<256x256xbf16, #tpu.memory_space<vmem>>, %arg3: memref<1x256xf32, #tpu.memory_space<vmem>>, %arg4: memref<256x1xbf16, #tpu.memory_space<vmem>>, %arg5: memref<1x1xf32, #tpu.memory_space<vmem>>, %arg6: memref<1x1x256xf32, #tpu.memory_space<vmem>>) attributes {dimension_semantics = [#tpu.dimension_semantics<parallel>], iteration_bounds = array<i64: 2>, scalar_prefetch = 0 : i64, scratch_operands = 0 : i64, tpu.core_type = #tpu.core_type<tc>, window_params = [{transform_indices = @transform_0, window_bounds = array<i64: 1, 16, 256>}, {pipeline_mode = #tpu.pipeline_mode<synchronous>, transform_indices = @transform_1, window_bounds = array<i64: 256, 256>}, {pipeline_mode = #tpu.pipeline_mode<synchronous>, transform_indices = @transform_2, window_bounds = array<i64: 1, 256>}, {pipeline_mode = #tpu.pipeline_mode<synchronous>, transform_indices = @transform_3, window_bounds = array<i64: 256, 1>}, {pipeline_mode = #tpu.pipeline_mode<synchronous>, transform_indices = @transform_4, window_bounds = array<i64: 1, 1>}, {transform_indices = @transform_5, window_bounds = array<i64: 1, 1, 256>}]} {
    %c0 = arith.constant 0 : index
    %c0_0 = arith.constant 0 : index
    %c0_1 = arith.constant 0 : index
    %0 = vector.load %arg1[%c0, %c0_0, %c0_1] : memref<1x16x256xf32, #tpu.memory_space<vmem>>, vector<1x16x256xf32>
    %1 = vector.shape_cast %0 : vector<1x16x256xf32> to vector<16x256xf32>
    %2 = arith.truncf %1 : vector<16x256xf32> to vector<16x256xbf16>
    %c0_2 = arith.constant 0 : index
    %c0_3 = arith.constant 0 : index
    %3 = vector.load %arg2[%c0_2, %c0_3] : memref<256x256xbf16, #tpu.memory_space<vmem>>, vector<256x256xbf16>
    %cst = arith.constant dense<0.000000e+00> : vector<16x256xf32>
    %4 = tpu.matmul %2, %3, %cst {dimension_numbers = #tpu.dot_dimension_numbers<[1], [0], [0], [1], [0, 0, 1, 1], [], []>} : vector<16x256xbf16>, vector<256x256xbf16>, vector<16x256xf32> -> vector<16x256xf32>
    %c0_4 = arith.constant 0 : index
    %c0_5 = arith.constant 0 : index
    %5 = vector.load %arg3[%c0_4, %c0_5] : memref<1x256xf32, #tpu.memory_space<vmem>>, vector<1x256xf32>
    %6 = vector.broadcast %5 : vector<1x256xf32> to vector<16x256xf32>
    %7 = arith.addf %4, %6 : vector<16x256xf32>
    %8 = math.tanh %7 : vector<16x256xf32>
    %9 = arith.truncf %8 : vector<16x256xf32> to vector<16x256xbf16>
    %c0_6 = arith.constant 0 : index
    %c0_7 = arith.constant 0 : index
    %10 = vector.load %arg4[%c0_6, %c0_7] : memref<256x1xbf16, #tpu.memory_space<vmem>>, vector<256x1xbf16>
    %cst_8 = arith.constant dense<0.000000e+00> : vector<16x1xf32>
    %11 = tpu.matmul %9, %10, %cst_8 {dimension_numbers = #tpu.dot_dimension_numbers<[1], [0], [0], [1], [0, 0, 1, 1], [], []>} : vector<16x256xbf16>, vector<256x1xbf16>, vector<16x1xf32> -> vector<16x1xf32>
    %c0_9 = arith.constant 0 : index
    %c0_10 = arith.constant 0 : index
    %12 = vector.load %arg5[%c0_9, %c0_10] : memref<1x1xf32, #tpu.memory_space<vmem>>, vector<1x1xf32>
    %13 = vector.broadcast %12 : vector<1x1xf32> to vector<16x1xf32>
    %14 = arith.addf %11, %13 : vector<16x1xf32>
    %cst_11 = arith.constant dense<0xFF800000> : vector<1xf32>
    %15 = vector.multi_reduction <maximumf>, %14, %cst_11 [0] : vector<16x1xf32> to vector<1xf32>
    %16 = vector.shape_cast %15 : vector<1xf32> to vector<1x1xf32>
    %17 = vector.broadcast %16 : vector<1x1xf32> to vector<16x1xf32>
    %18 = arith.subf %14, %17 : vector<16x1xf32>
    %19 = math.exp %18 : vector<16x1xf32>
    %20 = tpu.iota {dimensions = array<i32: 0>} : vector<16x1xi32>
    %21 = tpu.iota {dimensions = array<i32: 1>} : vector<16x1xi32>
    %c16_i32 = arith.constant 16 : i32
    %22 = vector.broadcast %c16_i32 : i32 to vector<16x1xi32>
    %23 = arith.muli %21, %22 : vector<16x1xi32>
    %24 = arith.cmpi sge, %20, %23 : vector<16x1xi32>
    %c1_i32 = arith.constant 1 : i32
    %25 = vector.broadcast %c1_i32 : i32 to vector<16x1xi32>
    %26 = arith.addi %21, %25 : vector<16x1xi32>
    %c16_i32_12 = arith.constant 16 : i32
    %27 = vector.broadcast %c16_i32_12 : i32 to vector<16x1xi32>
    %28 = arith.muli %26, %27 : vector<16x1xi32>
    %29 = arith.cmpi slt, %20, %28 : vector<16x1xi32>
    %30 = arith.andi %24, %29 : vector<16x1xi1>
    %cst_13 = arith.constant 0.000000e+00 : f32
    %31 = vector.broadcast %cst_13 : f32 to vector<16x1xf32>
    %32 = arith.select %30, %19, %31 : vector<16x1xi1>, vector<16x1xf32>
    %cst_14 = arith.constant 1.000000e+00 : f32
    %33 = vector.broadcast %cst_14 : f32 to vector<16x1xf32>
    %cst_15 = arith.constant dense<0.000000e+00> : vector<1x1xf32>
    %34 = tpu.matmul %32, %33, %cst_15 {dimension_numbers = #tpu.dot_dimension_numbers<[0], [0], [1], [1], [0, 1, 1, 1], [], []>} : vector<16x1xf32>, vector<16x1xf32>, vector<1x1xf32> -> vector<1x1xf32>
    %cst_16 = arith.constant dense<0.000000e+00> : vector<1x256xf32>
    %35 = tpu.matmul %32, %1, %cst_16 {dimension_numbers = #tpu.dot_dimension_numbers<[0], [0], [1], [1], [0, 1, 1, 1], [], []>} : vector<16x1xf32>, vector<16x256xf32>, vector<1x256xf32> -> vector<1x256xf32>
    %36 = tpu.reciprocal %34 {approx = true} : vector<1x1xf32> -> vector<1x1xf32>
    %37 = vector.broadcast %36 : vector<1x1xf32> to vector<1x256xf32>
    %38 = arith.mulf %35, %37 : vector<1x256xf32>
    %c0_17 = arith.constant 0 : index
    %c0_18 = arith.constant 0 : index
    %c0_19 = arith.constant 0 : index
    %39 = vector.load %arg6[%c0_17, %c0_18, %c0_19] : memref<1x1x256xf32, #tpu.memory_space<vmem>>, vector<1x1x256xf32>
    %40 = vector.shape_cast %39 : vector<1x1x256xf32> to vector<1x256xf32>
    %41 = vector.shape_cast %38 : vector<1x256xf32> to vector<1x1x256xf32>
    tpu.vector_store %arg6[%c0_17, %c0_18, %c0_19], %41 {strides = array<i32>} : memref<1x1x256xf32, #tpu.memory_space<vmem>>, vector<1x1x256xf32>,
    return
  }
  func.func @transform_0(%arg0: i32) -> (i32, i32, i32) {
    %c0_i32 = arith.constant 0 : i32
    %c0_i32_0 = arith.constant 0 : i32
    %c0_i32_1 = arith.constant 0 : i32
    return %arg0, %c0_i32, %c0_i32_0 : i32, i32, i32
  }
  func.func @transform_1(%arg0: i32) -> (i32, i32) {
    %c0_i32 = arith.constant 0 : i32
    %c0_i32_0 = arith.constant 0 : i32
    %c0_i32_1 = arith.constant 0 : i32
    return %c0_i32, %c0_i32_0 : i32, i32
  }
  func.func @transform_2(%arg0: i32) -> (i32, i32) {
    %c0_i32 = arith.constant 0 : i32
    %c0_i32_0 = arith.constant 0 : i32
    %c0_i32_1 = arith.constant 0 : i32
    return %c0_i32, %c0_i32_0 : i32, i32
  }
  func.func @transform_3(%arg0: i32) -> (i32, i32) {
    %c0_i32 = arith.constant 0 : i32
    %c0_i32_0 = arith.constant 0 : i32
    %c0_i32_1 = arith.constant 0 : i32
    return %c0_i32, %c0_i32_0 : i32, i32
  }
  func.func @transform_4(%arg0: i32) -> (i32, i32) {
    %c0_i32 = arith.constant 0 : i32
    %c0_i32_0 = arith.constant 0 : i32
    %c0_i32_1 = arith.constant 0 : i32
    return %c0_i32, %c0_i32_0 : i32, i32
  }
  func.func @transform_5(%arg0: i32) -> (i32, i32, i32) {
    %c0_i32 = arith.constant 0 : i32
    %c0_i32_0 = arith.constant 0 : i32
    %c0_i32_1 = arith.constant 0 : i32
    return %arg0, %c0_i32, %c0_i32_0 : i32, i32, i32
  }
}

</mosaic_0001>

<bundles_post_ra>
// kernel: attention_forward.1
= control target key start
LH: loop header
LB: loop body
LE: loop exit
PB: predicated region body
PF: predicated region fallthrough
CT: control target
= control target key end

     0   :  { %s1195_s20 = smov 0   ;;  %s1388_s0 = inlined_call_operand.vmem [shape: f32[2,16,256], index: 0, kind: input, shape index: {}]   ;;  %s1389_s1 = inlined_call_operand.vmem [shape: bf16[256,256], index: 1, kind: input, shape index: {}]   ;;  %s1390_s2 = inlined_call_operand.vmem [shape: f32[1,256], index: 2, kind: input, shape index: {}]   ;;  %s1391_s3 = inlined_call_operand.vmem [shape: bf16[256,1], index: 3, kind: input, shape index: {}]   ;;  %s1392_s4 = inlined_call_operand.<no memory space> [shape: f32[1,1], index: 4, kind: input, shape index: {}]   ;;  %s1393_s5 = inlined_call_operand.vmem [shape: f32[2,1,256], index: 5, kind: output, shape index: {}]  }
   0x1   :  { %v10_v0 = vstv %s1392_s4 }
   0x2   :  { %11 = vst [vmem:[#allocation2] sm:$0x1] %v10_v0 }
   0x3 LB: > { %s954_s21 = sadd.s32 4294967295, %s1154_s20   ;;  %p958_p0 = scmp.ge.s32.totalorder %s1154_s20, 1  ;;  %s1154_s20 = sphi %s1195_s20, %s17_s20  }
   0x4   : > { %p189_p1 = scmp.lt.s32.totalorder %s1154_s20, 3 }
   0x6   : > { %p190_p2 = pnand %p958_p0, %p189_p1 }
   0x7   : > { %v1070_v1 = vld [vmem:[%s1389_s1 + $0x4] ss:$8 sps:$4 sm:$0xff] (!%p190_p2)   ;;  %v1072_v2 = vld [vmem:[%s1389_s1] ss:$8 sps:$4 sm:$0xff] (!%p190_p2)   ;;  %v1073_v3 = vld [vmem:[%s1389_s1 + $0x14] ss:$8 sps:$4 sm:$0xff] (!%p190_p2)   ;;  %v266_v55 = vlaneseq (!%p190_p2) }
   0x8   : > { %193 = sbr.rel (%p190_p2) target bundleno = 1042 (0x412), region = 40  ;;  %436 = vmatprep.subr.bf16.mxu0 (!%p190_p2), %v1070_v1  ;;  %v1075_v4 = vld [vmem:[%s1389_s1 + $0x10] ss:$8 sps:$4 sm:$0xff] (!%p190_p2)   ;;  %v1076_v5 = vld [vmem:[%s1389_s1 + $0x24] ss:$8 sps:$4 sm:$0xff] (!%p190_p2)   ;;  %p216_p3 = scmp.lt.s32.totalorder (!%p190_p2), %s954_s21, 1 }
   0x9   : > { %437 = vmatpush1.bf16.msra.mxu0 (!%p190_p2), %v1072_v2  ;;  %v1078_v6 = vld [vmem:[%s1389_s1 + $0x20] ss:$8 sps:$4 sm:$0xff] (!%p190_p2)   ;;  %v1079_v7 = vld [vmem:[%s1389_s1 + $0x34] ss:$8 sps:$4 sm:$0xff] (!%p190_p2)   ;;  %v1081_v8 = vld [vmem:[%s1389_s1 + $0x30] ss:$8 sps:$4 sm:$0xff] (!%p190_p2)  }
   0xa   : > { %438 = vmatprep.subr.bf16.mxu0 (!%p190_p2), %v1073_v3  ;;  %v1082_v9 = vld [vmem:[%s1389_s1 + $0x44] ss:$8 sps:$4 sm:$0xff] (!%p190_p2)   ;;  %v1084_v10 = vld [vmem:[%s1389_s1 + $0x40] ss:$8 sps:$4 sm:$0xff] (!%p190_p2)   ;;  %v1085_v11 = vld [vmem:[%s1389_s1 + $0x54] ss:$8 sps:$4 sm:$0xff] (!%p190_p2)  }
   0xb   : > { %v1087_v12 = vld [vmem:[%s1389_s1 + $0x50] ss:$8 sps:$4 sm:$0xff] (!%p190_p2)   ;;  %v1088_v13 = vld [vmem:[%s1389_s1 + $0x64] ss:$8 sps:$4 sm:$0xff] (!%p190_p2)   ;;  %v1090_v16 = vld [vmem:[%s1389_s1 + $0x60] ss:$8 sps:$4 sm:$0xff] (!%p190_p2)  }
   0xc   : > { %v1091_v17 = vld [vmem:[%s1389_s1 + $0x74] ss:$8 sps:$4 sm:$0xff] (!%p190_p2)   ;;  %v1118_v19 = vld [vmem:[%s1391_s3 + $0x40] sm:$0xff] (!%p190_p2)   ;;  %v1093_v21 = vld [vmem:[%s1389_s1 + $0x70] ss:$8 sps:$4 sm:$0xff] (!%p190_p2)   ;;  %v1366_v56 = vshrl.u32 (!%p190_p2), %v266_v55, 7 }
   0xd   : > { %439 = vmatpush1.bf16.msra.mxu0 (!%p190_p2), %v1075_v4  ;;  %v1119_v20 = vld [vmem:[%s1391_s3] sm:$0xff] (!%p190_p2)   ;;  %1016 = vmatprep.subr.bf16.mxu1 (!%p190_p2), %v1118_v19  ;;  %v1120_v22 = vld [vmem:[%s1391_s3 + $0x48] sm:$0xff] (!%p190_p2)   ;;  %v1122_v24 = vld [vmem:[%s1391_s3 + $0x50] sm:$0xff] (!%p190_p2)   ;;  %vm1157_vm0 = vmmov (!%p190_p2), 0   ;;  %vm661_vm1 = vcmask (!%p190_p2), 7168   ;;  %vm725_vm8 = vcmask (!%p190_p2), 130048  }
   0xe   : > { %440 = vmatprep.subr.bf16.mxu0 (!%p190_p2), %v1076_v5  ;;  %1017 = vmatpush3.bf16.msra.mxu1 (!%p190_p2), %v1119_v20  ;;  %v1121_v23 = vld [vmem:[%s1391_s3 + $0x8] sm:$0xff] (!%p190_p2)   ;;  %v1123_v26 = vld [vmem:[%s1391_s3 + $0x10] sm:$0xff] (!%p190_p2)   ;;  %v1124_v45 = vld [vmem:[%s1391_s3 + $0x58] sm:$0xff] (!%p190_p2)   ;;  %v268_v57 = vsub.s32 (!%p190_p2), 0, %v1366_v56  ;;  %v272_v59 = vsub.s32 (!%p190_p2), 1, %v1366_v56  ;;  %vm898_vm9 = vcmp.lt.s32.totalorder (!%p190_p2), %v266_v55, 256 }
   0xf   : > { %s1395_s21 = smov (!%p216_p3, %s954_s21), 1  ;;  %1018 = vmatprep.subr.bf16.mxu1 %v1120_v22  ;;  %v1094_v25 = vld [vmem:[%s1389_s1 + $0x84] ss:$8 sps:$4 sm:$0xff]   ;;  %v1096_v27 = vld [vmem:[%s1389_s1 + $0x80] ss:$8 sps:$4 sm:$0xff]   ;;  %v1125_v46 = vld [vmem:[%s1391_s3 + $0x18] sm:$0xff]  }
  0x10   : > { %s1015_s16 = sshll.u32 %s1395_s21, 5  ;;  %v1097_v28 = vld [vmem:[%s1389_s1 + $0x94] ss:$8 sps:$4 sm:$0xff]   ;;  %v1099_v29 = vld [vmem:[%s1389_s1 + $0x90] ss:$8 sps:$4 sm:$0xff]   ;;  %v1126_v47 = vld [vmem:[%s1391_s3 + $0x60] sm:$0xff]  }
  0x11   : > { %441 = vmatpush1.bf16.msra.mxu0 %v1078_v6  ;;  %s1242_s23 = scalar_lea.vmem %s1388_s0, %s1015_s16  ;;  %v1100_v30 = vld [vmem:[%s1389_s1 + $0xa4] ss:$8 sps:$4 sm:$0xff]   ;;  %v1102_v31 = vld [vmem:[%s1389_s1 + $0xa0] ss:$8 sps:$4 sm:$0xff]   ;;  %v1103_v32 = vld [vmem:[%s1389_s1 + $0xb4] ss:$8 sps:$4 sm:$0xff]  }
  0x12   : > { %442 = vmatprep.subr.bf16.mxu0 %v1079_v7  ;;  %v227_v14 = vld [vmem:[%s1242_s23 + $0x8] sm:$0xff]  ;;  %v229_v15 = vld [vmem:[%s1242_s23 + $0x18] sm:$0xff]  ;;  %1019 = vmatpush3.bf16.msra.mxu1 %v1121_v23  ;;  %v226_v42 = vld [vmem:[%s1242_s23] sm:$0xff]  ;;  %s961_s29 = sshll.u32 %s1395_s21, 1 }
  0x13   : > { %v1258_v18 = vpack.c.bf16 %v229_v15, %v227_v14  ;;  %1020 = vmatprep.subr.bf16.mxu1 %v1122_v24  ;;  %v1105_v33 = vld [vmem:[%s1389_s1 + $0xb0] ss:$8 sps:$4 sm:$0xff]   ;;  %v1106_v34 = vld [vmem:[%s1389_s1 + $0xc4] ss:$8 sps:$4 sm:$0xff]   ;;  %v1108_v35 = vld [vmem:[%s1389_s1 + $0xc0] ss:$8 sps:$4 sm:$0xff]   ;;  %s224_s7 = scalar_lea.vmem %s1393_s5, %s961_s29 }
  0x14   : > { %v1109_v36 = vld [vmem:[%s1389_s1 + $0xd4] ss:$8 sps:$4 sm:$0xff]   ;;  %v1111_v37 = vld [vmem:[%s1389_s1 + $0xd0] ss:$8 sps:$4 sm:$0xff]   ;;  %v1112_v38 = vld [vmem:[%s1389_s1 + $0xe4] ss:$8 sps:$4 sm:$0xff]  }
  0x15   : > { %443 = vmatpush1.bf16.msra.mxu0 %v1081_v8  ;;  %468 = vmatprep.mubr.bf16.mxu0 %v1258_v18  ;;  %v1114_v39 = vld [vmem:[%s1389_s1 + $0xe0] ss:$8 sps:$4 sm:$0xff]   ;;  %v1115_v40 = vld [vmem:[%s1389_s1 + $0xf4] ss:$8 sps:$4 sm:$0xff]   ;;  %v1117_v41 = vld [vmem:[%s1389_s1 + $0xf0] ss:$8 sps:$4 sm:$0xff]  }
  0x16   : > { %444 = vmatprep.subr.bf16.mxu0 %v1082_v9  ;;  %1021 = vmatpush3.bf16.msra.mxu1 %v1123_v26  ;;  %v228_v43 = vld [vmem:[%s1242_s23 + $0x10] sm:$0xff]  ;;  %v1127_v48 = vld [vmem:[%s1391_s3 + $0x20] sm:$0xff]   ;;  %v1128_v49 = vld [vmem:[%s1391_s3 + $0x68] sm:$0xff]   ;;  %v1159_v14 = vmov 1.0|1.0  }
  0x17   : > { %v1332_v44 = vpack.c.bf16 %v228_v43, %v226_v42  ;;  %1022 = vmatprep.subr.bf16.mxu1 %v1124_v45  ;;  %v1129_v50 = vld [vmem:[%s1391_s3 + $0x28] sm:$0xff]   ;;  %v1130_v51 = vld [vmem:[%s1391_s3 + $0x70] sm:$0xff]   ;;  %v1132_v53 = vld [vmem:[%s1391_s3 + $0x78] sm:$0xff]  }
  0x18   : > { %v1131_v52 = vld [vmem:[%s1391_s3 + $0x30] sm:$0xff]   ;;  %v1133_v54 = vld [vmem:[%s1391_s3 + $0x38] sm:$0xff]   ;;  %v264_v58 = vld [vmem:[%s1390_s2] sm:$0x3] }
  0x19   : > { %445 = vmatpush1.bf16.msra.mxu0 %v1084_v10  ;;  %v269_v60 = vrot.slane %v264_v58, %v268_v57  ;;  %v273_v61 = vrot.slane %v264_v58, %v272_v59 }
  0x1a   : > { %446 = vmatprep.subr.bf16.mxu0 %v1085_v11  ;;  %1023 = vmatpush3.bf16.msra.mxu1 %v1125_v46 }
  0x1b   : > { %1024 = vmatprep.subr.bf16.mxu1 %v1126_v47 }
  0x1d   : > { %447 = vmatpush1.bf16.msra.mxu0 %v1087_v12  ;;  %v1156_v12 = vmov 0.0|0.0  }
  0x1e   : > { %448 = vmatprep.subr.bf16.mxu0 %v1088_v13  ;;  %1025 = vmatpush3.bf16.msra.mxu1 %v1127_v48  ;;  %v1158_v13 = vmov 0.0   ;;  %v1160_v48 = vmov 0  }
  0x1f   : > { %1026 = vmatprep.subr.bf16.mxu1 %v1128_v49  ;;  %1068 = vset.pattern.permute.xlu1 %v1160_v48 }
  0x21   : > { %449 = vmatpush1.bf16.msra.mxu0 %v1090_v16  ;;  %v994_v16 = vld [vmem:[#allocation2] ss:$0 sm:$0xff] }
  0x22   : > { %450 = vmatprep.subr.bf16.mxu0 %v1091_v17  ;;  %1027 = vmatpush3.bf16.msra.mxu1 %v1129_v50 }
  0x23   : > { %1028 = vmatprep.subr.bf16.mxu1 %v1130_v51 }
  0x25   : > { %451 = vmatpush1.bf16.msra.mxu0 %v1093_v21 }
  0x26   : > { %452 = vmatprep.subr.bf16.mxu0 %v1094_v25  ;;  %1029 = vmatpush3.bf16.msra.mxu1 %v1131_v52 }
  0x27   : > { %1030 = vmatprep.subr.bf16.mxu1 %v1132_v53 }
  0x29   : > { %453 = vmatpush1.bf16.msra.mxu0 %v1096_v27 }
  0x2a   : > { %454 = vmatprep.subr.bf16.mxu0 %v1097_v28  ;;  %1031 = vmatpush3.bf16.msra.mxu1 %v1133_v54  ;;  %v1161_v54 = vmov 1966171168  }
  0x2b   : > { %1048 = vmatprep.subr.bf16.mxu1 %v1156_v12  ;;  %v882_v57 = vunpack.c.l.s4 %v1161_v54 }
  0x2d   : > { %455 = vmatpush1.bf16.msra.mxu0 %v1099_v29  ;;  %v883_v58 = vunpack.c.0.s8 %v882_v57 }
  0x2e   : > { %456 = vmatprep.subr.bf16.mxu0 %v1100_v30 }
  0x31   : > { %457 = vmatpush1.bf16.msra.mxu0 %v1102_v31 }
  0x32   : > { %458 = vmatprep.subr.bf16.mxu0 %v1103_v32 }
  0x35   : > { %459 = vmatpush1.bf16.msra.mxu0 %v1105_v33 }
  0x36   : > { %460 = vmatprep.subr.bf16.mxu0 %v1106_v34 }
  0x39   : > { %461 = vmatpush1.bf16.msra.mxu0 %v1108_v35 }
  0x3a   : > { %462 = vmatprep.subr.bf16.mxu0 %v1109_v36 }
  0x3d   : > { %463 = vmatpush1.bf16.msra.mxu0 %v1111_v37 }
  0x3e   : > { %464 = vmatprep.subr.bf16.mxu0 %v1112_v38 }
  0x41   : > { %465 = vmatpush1.bf16.msra.mxu0 %v1114_v39 }
  0x42   : > { %466 = vmatprep.subr.bf16.mxu0 %v1115_v40 }
  0x45   : > { %467 = vmatpush1.bf16.msra.mxu0 %v1117_v41  ;;  %v679_v41 = vadd.s32 8, %v1366_v56 }
  0x48   : > { %469 = vmatmul.mubr.bf16.vlgmr.msra.gmra.mrb[0].mxu0 %v1332_v44 }
 0x11b   : > { %v470_v62 = vpop.f32.mrb[0].mxu0 }
 0x11c   : > { %v471_v63 = vadd.f32 %v470_v62, %v269_v60  ;;  %v472_v0 = vpop.f32.mrb[1].mxu0 }
 0x11d   : > { %v473_v1 = vadd.f32 %v472_v0, %v273_v61  ;;  %v474_v2 = vpop.f32.mrb[2].mxu0 }
 0x11e   : > { %1134 = vtanh.f32 %v471_v63  ;;  %v475_v3 = vadd.f32 %v474_v2, %v269_v60  ;;  %v476_v4 = vpop.f32.mrb[3].mxu0  ;;  %v886_v60 = vsub.s32 %v883_v58, %v1366_v56 }
 0x11f   : > { %1136 = vtanh.f32 %v473_v1  ;;  %v477_v5 = vadd.f32 %v476_v4, %v273_v61 }
 0x120   : > { %1138 = vtanh.f32 %v475_v3 }
 0x121   : > { %1140 = vtanh.f32 %v477_v5 }
 0x128   : > { %v1135_v6 = vpop.eup %1134 }
 0x129   : > { %v1137_v7 = vpop.eup %1136 }
 0x12a   : > { %v1139_v8 = vpop.eup %1138 }
 0x12b   : > { %v1141_v9 = vpop.eup %1140  ;;  %v483_v10 = vpack.c.bf16 %v1139_v8, %v1135_v6 }
 0x12c   : > { %v484_v11 = vpack.c.bf16 %v1141_v9, %v1137_v7 }
 0x12e   : > { %652 = vmatprep.mubr.bf16.mxu1 %v484_v11 }
 0x12f   : > { %653 = vmatmul.mubr.bf16.vlgmr.msra.gmra.mrb[0].mxu1 %v483_v10 }
 0x130   : > { %1045 = vmatprep.mubr.msk.f32.mxu1 %vm1157_vm0, %v1158_v13  ;;  %1049 = vmatpush3.bf16.msra.mxu1 %v1159_v14 }
 0x131   : > { %1051 = vmatprep.subr.bf16.mxu1 %v1258_v18  ;;  %v681_v18 = vand.u32 127, %v266_v55 }
 0x133   : > { %v685_v36 = vadd.s32 1, %v681_v18  ;;  %v682_v39 = vmul.u32 16, %v681_v18 }
 0x135   : > { %v686_v40 = vmul.u32 16, %v685_v36  ;;  %vm683_vm2 = vcmp.ge.s32.totalorder %v1366_v56, %v682_v39  ;;  %vm684_vm5 = vcmp.ge.s32.totalorder %v679_v41, %v682_v39 }
 0x137   : > { %vm687_vm3 = vcmp.lt.s32.totalorder %v1366_v56, %v686_v40  ;;  %vm688_vm6 = vcmp.lt.s32.totalorder %v679_v41, %v686_v40 }
 0x138   : > { %vm689_vm4 = vmand %vm683_vm2, %vm687_vm3 }
 0x139   : > { %vm690_vm7 = vmand %vm684_vm5, %vm688_vm6 }
 0x202   : > { %v1032_v15 = vpop.f32.mrb[0].mxu1 }
 0x203   : > { %v1033_v17 = vpop.f32.mrb[1].mxu1 }
 0x204   : > { %v1034_v19 = vadd.f32 %v1033_v17, %v1032_v15  ;;  %v1035_v20 = vpop.f32.mrb[2].mxu1 }
 0x205   : > { %v1036_v21 = vpop.f32.mrb[3].mxu1 }
 0x206   : > { %v655_v22 = vadd.f32 %v1034_v19, %v994_v16  ;;  %v1037_v23 = vadd.f32 %v1036_v21, %v1035_v20 }
 0x208   : > { %v658_v24 = vadd.f32 %v1037_v23, %v994_v16  ;;  %v662_v25 = vsel %vm661_vm1, %v655_v22, -inf }
 0x20a   : > { %v663_v26 = vsel %vm661_vm1, %v658_v24, -inf }
 0x20b   : > { %v664_v27 = vmax.f32 %v662_v25, %v663_v26 }
 0x20d   : > { %v665_v28 = vrot.slane %v664_v27, 4 }
 0x20f   : > { %v666_v29 = vmax.f32 %v664_v27, %v665_v28 }
 0x211   : > { %v667_v30 = vrot.slane %v666_v29, 2 }
 0x213   : > { %v668_v31 = vmax.f32 %v666_v29, %v667_v30 }
 0x215   : > { %v669_v32 = vrot.slane %v668_v31, 1 }
 0x217   : > { %v670_v33 = vmax.f32 %v668_v31, %v669_v32 }
 0x219   : > { %v671_v34 = vsub.f32 %v655_v22, %v670_v33  ;;  %v672_v35 = vsub.f32 %v658_v24, %v670_v33 }
 0x21b   : > { %v673_v37 = vmul.f32 1.442695, %v671_v34  ;;  %v675_v38 = vmul.f32 1.442695, %v672_v35 }
 0x21d   : > { %1142 = vpow2.f32 %v673_v37 }
 0x21e   : > { %1144 = vpow2.f32 %v675_v38 }
 0x227   : > { %v1143_v42 = vpop.eup %1142 }
 0x228   : > { %v691_v43 = vsel %vm689_vm4, %v1143_v42, 0.0  ;;  %v1145_v45 = vpop.eup %1144 }
 0x229   : > { %693 = vxpose.xlu0.b32.start [1/2] (short) (narrow) %v691_v43, 8  ;;  %v692_v46 = vsel %vm690_vm7, %v1145_v45, 0.0 }
 0x22d   : > { %694 = vxpose.xlu0.b32.end [2/2] (short) (narrow) %v692_v46, 8 }
 0x256   : > { %1069 = vset.pattern.permute.xlu0 %v1160_v48 }
 0x2a9   : > { %v709_v47 = vpop.trf.xlu0 }
 0x2aa   : > { %1046 = vmatmul.mubr.msk.f32.vlgmr.msra.gmra.mrb[4].mxu1 %vm725_vm8, %v709_v47 }
 0x2ab   : > { %1053 = vmatpush1.bf16.msra.mxu1 %v1332_v44  ;;  %863 = vmatprep.mubr.f32.mxu1 %v1158_v13 }
 0x2ae   : > { %1012 = vmatmul.mubr.msk.f32.vlgmr.msra.gmra.mrb[6].mxu1 %vm725_vm8, %v709_v47 }
 0x37d   : > { %v795_v49 = vpop.f32.mrb[4].mxu1 }
 0x37e   : > { %1146 = vrcp.f32 %v795_v49  ;;  %v1047_v50 = vpop.f32.mrb[5].mxu1 }
 0x381   : > { %v865_v51 = vpop.f32.mrb[6].mxu1 }
 0x382   : > { %v867_v52 = vpop.f32.mrb[7].mxu1 }
 0x388   : > { %v1147_v53 = vpop.eup %1146 }
 0x389   : > { %873 = vperm.xlu1 %1068, %v1147_v53  }
 0x408   : > { %v874_v59 = vpop.permute.xlu1 %873 }
 0x409   : > { %v876_v44 = vmul.f32 %v874_v59, %v865_v51  ;;  %v877_v61 = vmul.f32 %v874_v59, %v867_v52 }
 0x40b   : > { %v880_v62 = vcombine.low %v876_v44, %v877_v61 }
 0x40d   : > { %v887_v63 = vrot.slane %v880_v62, %v886_v60 }
 0x40f   : > { %v894_v0 = vrot.slane %v887_v63, %v886_v60 }
 0x411   : > { %900 = vst.msk [vmem:[%s224_s7] sm:$0x3] %vm898_vm9, %v894_v0 }
 0x412 PF: > { %s17_s20 = sadd.s32 1, %s1154_s20  }
 0x413   : > { %p14_p4 = scmp.ge.s32.totalorder %s17_s20, 4  }
 0x415   :  { %16 = sbr.rel (!%p14_p4) target bundleno = 3 (0x3), region = 70 }

</bundles_post_ra>
